<compile_context>
chip_gen: v7x
topology: tpu7x:2x2x1
jax: 0.10.0
libtpu: 0.0.40
codegen_flags: <defaults>
</compile_context>

<pallas_src>
import math
import functools
from typing import NamedTuple, Optional

import jax
import jax.numpy as jnp
from jax.experimental import pallas as pl
from jax.experimental.pallas import tpu as pltpu


def _round_up(x: int, m: int) -> int:
    return ((x + m - 1) // m) * m


@functools.lru_cache(maxsize=1)
def _tpu_vmem_info():
    """Best-effort (vmem_bytes_per_core, multi_tensorcore) with safe fallbacks."""
    vmem_bytes = 128 * 1024 * 1024          # v5e / v6e physical VMEM per core
    multi_tc = False
    kind = ""
    try:
        kind = jax.devices()[0].device_kind.lower()
    except Exception:
        pass
    if "v7" in kind:
        vmem_bytes = 64 * 1024 * 1024       # v7x: 64 MiB per TensorCore
        multi_tc = True                     # 2 TCs/chip -> want >= 2 parallel steps
    try:
        vmem_bytes = int(pltpu.get_tpu_info().vmem_capacity_bytes)
    except Exception:
        pass                                # keep device_kind-derived default
    return vmem_bytes, multi_tc


def _zeroshot_fc_kernel(x_ref, w_ref, b_ref, zsw_ref, o_ref, xn_ref, *,
                        norm_temperature):
    """One (row-tile, class-tile) grid step.

    x_ref   : (tm, Dk)   input rows (any float dtype; cast to MXU dtype in-kernel)
    w_ref   : (Dk, Dp)   projection weight, pre-transposed (compute dtype)
    b_ref   : (1,  Dp)   projection bias (f32)
    zsw_ref : (Dp, tc)   zero-shot classifier tile (compute dtype, cols L2-normed)
    o_ref   : (tm, tc)   output logits tile (out dtype)
    xn_ref  : (tm, Dp)   VMEM scratch: normalized projection, reused across the
                         class-tile (inner, "arbitrary") grid axis.
    """
    j = pl.program_id(1)

    @pl.when(j == 0)
    def _():
        # 1) projection: x @ W^T + b (W stored pre-transposed), f32 accumulation.
        #    The astype folds the compute-dtype cast into the kernel (VPU work,
        #    hidden under the MXU) so the wrapper never needs a cast-only pass.
        proj = jnp.dot(x_ref[...].astype(w_ref.dtype), w_ref[...],
                       preferred_element_type=jnp.float32)
        proj = proj + b_ref[...]
        # 2) row-wise L2 normalize * temperature.  F.normalize clamps the norm
        #    at eps=1e-12, i.e. rsqrt(max(sq, eps^2)); rsqrt runs on the EUP slot
        #    and the div+mul collapses into a single mul.
        sq = jnp.sum(proj * proj, axis=-1, keepdims=True)
        scale = norm_temperature * jax.lax.rsqrt(jnp.maximum(sq, 1e-24))
        xn_ref[...] = (proj * scale).astype(xn_ref.dtype)

    # 3) classifier matmul against this class tile.
    o_ref[...] = jnp.dot(xn_ref[...], zsw_ref[...],
                         preferred_element_type=jnp.float32).astype(o_ref.dtype)
    # TODO(synk): optionally fuse the downstream sigmoid here so f32 logits
    # never hit HBM when only probabilities are consumed.


class PreparedZeroShotFC(NamedTuple):
    w_t: jax.Array      # (Dk, Dp)  compute dtype, zero padded, pre-transposed
    bias: jax.Array     # (1,  Dp)  float32, zero padded
    zsw: jax.Array      # (Dp, Cp)  compute dtype, zero padded
    d_in: int           # unpadded input feature size
    num_out: int        # C + 1 (unpadded logits width)
    tc: int             # class tile (multiple of 256, divides Cp)


def prepare_zeroshot_params(linear_w, linear_b, zs_weight, *,
                            compute_dtype=jnp.bfloat16, tc: Optional[int] = None):
    """Pre-transpose / zero-pad the weights once (hoisted out of the per-call
    path) and pick the class tile.

    compute_dtype=jnp.bfloat16 feeds the MXU at full bf16 throughput (f32
    accumulation inside the kernel); pass jnp.float32 for a pure-f32 path.
    tc=None derives the class tile from the queried VMEM size: the class axis is
    collapsed (zsw fetched once) when the whole classifier fits, else tc=1024.
    """
    d_proj, d_in = linear_w.shape
    assert zs_weight.shape[0] == d_proj
    num_out = zs_weight.shape[1]
    itemsize = jnp.dtype(compute_dtype).itemsize

    dk = _round_up(d_in, 128)     # 128: keeps already-aligned x zero-copy
    dp = _round_up(d_proj, 256)   # 256: fills the v6e/v7x 256-wide MXU (N and K)

    vmem_bytes, _ = _tpu_vmem_info()
    cp_min = _round_up(num_out, 256)
    if tc is None:
        # Collapse the class axis when the whole padded classifier is small
        # (<= 1/8 of physical VMEM: ~16 MiB on v5e/v6e, ~8 MiB on v7x): its
        # block index becomes constant and it is streamed from HBM exactly once.
        if dp * cp_min * itemsize <= vmem_bytes // 8:
            tc_eff = cp_min
        else:
            tc_eff = min(1024, cp_min)
    else:
        tc_eff = _round_up(tc, 256)
    cp = _round_up(num_out, tc_eff)

    w_t = jnp.zeros((dk, dp), compute_dtype)
    w_t = w_t.at[:d_in, :d_proj].set(linear_w.T.astype(compute_dtype))
    bias = jnp.zeros((1, dp), jnp.float32)
    bias = bias.at[0, :d_proj].set(linear_b.astype(jnp.float32))
    zsw = jnp.zeros((dp, cp), compute_dtype)
    zsw = zsw.at[:d_proj, :num_out].set(zs_weight.astype(compute_dtype))
    return PreparedZeroShotFC(w_t, bias, zsw, int(d_in), int(num_out), int(tc_eff))


def _vmem_bytes_estimate(tm, dk, dp, tc, it_x, it_in, it_out):
    """Conservative working-set estimate: every block double-buffered (treating
    the single-buffered constant blocks as extra headroom, not counted on)."""
    b = 2 * tm * dk * it_x            # x block
    b += 2 * dk * dp * it_in          # projection weight (constant index)
    b += 2 * 8 * dp * 4               # bias, sublane-padded, f32
    b += 2 * dp * tc * it_in          # classifier tile
    b += 2 * tm * tc * it_out         # logits tile
    b += tm * dp * it_in              # xn scratch (not buffered)
    return b


# Lazily resolved: does this jax/Mosaic build accept pl.Buffered(1) blocks?
_single_buffer_ok = None


def zeroshot_fc_forward(x, params: PreparedZeroShotFC, *,
                        norm_temperature=50.0, tm: Optional[int] = None,
                        out_dtype=jnp.float32):
    """x: (..., D_in) float.  Returns logits (..., num_classes + 1) in out_dtype.

    out_dtype=jnp.bfloat16 halves the dominant logits writeback stream; keep the
    default f32 when bit-parity with the PyTorch f32 forward matters for eval.
    """
    global _single_buffer_ok
    w_t, bias, zsw, d_in, num_out, tc = params
    dk, dp = w_t.shape
    cp = zsw.shape[1]
    cdt = w_t.dtype
    it_in = jnp.dtype(cdt).itemsize
    it_out = jnp.dtype(out_dtype).itemsize
    it_x = max(it_in, jnp.dtype(x.dtype).itemsize)

    x_shape = x.shape
    assert x_shape[-1] == d_in
    x2 = x.reshape(-1, d_in)
    m = x2.shape[0]

    vmem_bytes, multi_tc = _tpu_vmem_info()
    vmem_budget = vmem_bytes // 2     # leave half for Mosaic internals / pipelining

    # Row tile: generation-aware default, shrunk until the working set fits the
    # budget and shrunk for tiny inputs.  Sublane granularity: 8 rows for f32,
    # 16 rows once any packed (sub-32-bit) dtype is involved.
    row_align = 16 if min(it_in, it_x, it_out) < 4 else 8
    if tm is None:
        tm = 2048 if vmem_bytes >= 96 * 1024 * 1024 else 1024
    tm_eff = min(_round_up(tm, row_align), _round_up(max(m, 1), row_align))
    while (tm_eff > row_align and
           _vmem_bytes_estimate(tm_eff, dk, dp, tc, it_x, it_in, it_out) > vmem_budget):
        tm_eff = _round_up(tm_eff // 2, row_align)
    # Only split tiny inputs into >= 2 row tiles on multi-TensorCore parts (v7x,
    # megacore sharding of the "parallel" axis); on v5e/v6e the grid is a serial
    # loop and halving tm would only add per-step overhead.
    if multi_tc and pl.cdiv(m, tm_eff) < 2 and tm_eff >= 2 * row_align:
        tm_eff = _round_up(pl.cdiv(tm_eff, 2), row_align)
    m_pad = _round_up(m, tm_eff)

    # Skip the host-side pad/cast materialization of x when nothing needs
    # padding: the compute-dtype cast then happens in-kernel (no extra HBM pass).
    if d_in == dk and m == m_pad:
        x_p = x2
    else:
        x_p = jnp.zeros((m_pad, dk), cdt).at[:m, :d_in].set(x2.astype(cdt))

    grid = (m_pad // tm_eff, cp // tc)
    kernel = functools.partial(_zeroshot_fc_kernel,
                               norm_temperature=norm_temperature)

    est = _vmem_bytes_estimate(tm_eff, dk, dp, tc, it_x, it_in, it_out)
    # Computed scoped-VMEM budget with 2x slack, capped at 3/4 of physical so we
    # never claim the whole 64 MiB per-core VMEM on v7x.
    vmem_limit = int(max(32 * 1024 * 1024,
                         min(2 * est + 8 * 1024 * 1024, (vmem_bytes * 3) // 4)))

    zsw_is_const = (cp == tc)   # collapsed class axis -> constant block index

    def make_call(single_buffer: bool):
        def const_spec(shape, index_map):
            # Constant-index blocks are fetched once; single-buffering them
            # halves their resident VMEM (matters on v7x's 64 MiB/TC).
            if single_buffer:
                return pl.BlockSpec(shape, index_map, pipeline_mode=pl.Buffered(1))
            return pl.BlockSpec(shape, index_map)

        zsw_spec = (const_spec((dp, tc), lambda i, j: (0, j)) if zsw_is_const
                    else pl.BlockSpec((dp, tc), lambda i, j: (0, j)))

        return pl.pallas_call(
            kernel,
            out_shape=jax.ShapeDtypeStruct((m_pad, cp), out_dtype),
            grid_spec=pltpu.PrefetchScalarGridSpec(
                num_scalar_prefetch=0,
                grid=grid,
                in_specs=[
                    # x stays double-buffered: its next row tile must prefetch
                    # while the class-tile loop for the current tile runs.
                    pl.BlockSpec((tm_eff, dk), lambda i, j: (i, 0)),
                    const_spec((dk, dp), lambda i, j: (0, 0)),
                    const_spec((1, dp), lambda i, j: (0, 0)),
                    zsw_spec,
                ],
                out_specs=pl.BlockSpec((tm_eff, tc), lambda i, j: (i, j)),
                scratch_shapes=[pltpu.VMEM((tm_eff, dp), cdt)],
            ),
            compiler_params=pltpu.CompilerParams(
                # rows: independent (megacore-shardable); class tiles reuse the
                # xn scratch written at j == 0, so that axis must stay sequential.
                dimension_semantics=("parallel", "arbitrary"),
                vmem_limit_bytes=vmem_limit,
            ),
        )

    want_sb = hasattr(pl, "Buffered") and _single_buffer_ok is not False
    if want_sb:
        try:
            out = make_call(True)(x_p, w_t, bias, zsw)
            if _single_buffer_ok is None:
                jax.block_until_ready(out)   # force compile errors to surface once
            _single_buffer_ok = True
        except Exception:
            # This build rejects single-buffered blocks; fall back (correctness
            # identical, just 1-2 MiB more resident VMEM for the weights).
            _single_buffer_ok = False
            out = make_call(False)(x_p, w_t, bias, zsw)
    else:
        out = make_call(False)(x_p, w_t, bias, zsw)

    out = out[:m, :num_out]
    return out.reshape(x_shape[:-1] + (num_out,))


def build_params(key, *, input_size, zs_weight_dim, num_classes,
                 use_sigmoid_ce=True, prior_prob=0.01, norm_weight=True):
    """Deterministic synthetic init mirroring ZeroShotFC.__init__ (zs_weight_path='rand')."""
    k_lw, k_zs = jax.random.split(key, 2)
    # linear: weight ~ N(0, 0.01), bias = -log((1-p)/p) if sigmoid CE else 0
    linear_w = 0.01 * jax.random.normal(k_lw, (zs_weight_dim, input_size), jnp.float32)
    bias_value = -math.log((1.0 - prior_prob) / prior_prob) if use_sigmoid_ce else 0.0
    linear_b = jnp.full((zs_weight_dim,), bias_value, jnp.float32)
    # zs_weight ~ N(0, 0.01), shape (zs_weight_dim, num_classes); cat a zero column
    zsw = 0.01 * jax.random.normal(k_zs, (zs_weight_dim, num_classes), jnp.float32)
    zsw = jnp.concatenate([zsw, jnp.zeros((zs_weight_dim, 1), jnp.float32)], axis=1)
    if norm_weight:
        # F.normalize(p=2, dim=0): per-column L2 normalize with eps=1e-12
        col_norm = jnp.maximum(jnp.sqrt(jnp.sum(zsw * zsw, axis=0, keepdims=True)), 1e-12)
        zsw = zsw / col_norm
    return linear_w, linear_b, zsw


def _reference(x, linear_w, linear_b, zs_weight, norm_temperature):
    """Pure-JAX reference (same math as the PyTorch forward)."""
    lead = x.shape[:-1]
    x2 = x.reshape(-1, x.shape[-1])
    proj = x2 @ linear_w.T + linear_b
    xn = norm_temperature * proj / jnp.maximum(
        jnp.linalg.norm(proj, axis=1, keepdims=True), 1e-12)
    return (xn @ zs_weight).reshape(lead + (zs_weight.shape[1],))


if __name__ == "__main__":
    norm_temperature = 50.0
    key = jax.random.PRNGKey(0)
    k_xa, k_pa, k_xb, k_pb = jax.random.split(key, 4)

    # ---- Setup A: small shapes, collapsed class axis (default tc) ------------
    B, N, D_in = 2, 8, 32
    zs_dim_a, classes_a = 128, 15            # -> C+1 = 16 logits per row
    xa = jax.random.normal(k_xa, (B, N, D_in), jnp.float32)
    lw_a, lb_a, zs_a = build_params(k_pa, input_size=D_in,
                                    zs_weight_dim=zs_dim_a, num_classes=classes_a)
    ref_a = _reference(xa, lw_a, lb_a, zs_a, norm_temperature)

    # 1) f32 compute path: tight numerical check of the kernel math.
    p_f32 = prepare_zeroshot_params(lw_a, lb_a, zs_a, compute_dtype=jnp.float32)
    out = jax.block_until_ready(zeroshot_fc_forward(xa, p_f32,
                                                    norm_temperature=norm_temperature))
    assert out.shape == (B, N, classes_a + 1)
    assert jnp.allclose(out, ref_a, atol=2e-4, rtol=2e-4), "f32 path mismatch"

    # 2) default bf16-MXU path (f32 accumulation + f32 norm math): looser check.
    p_bf16 = prepare_zeroshot_params(lw_a, lb_a, zs_a, compute_dtype=jnp.bfloat16)
    out = jax.block_until_ready(zeroshot_fc_forward(xa, p_bf16,
                                                    norm_temperature=norm_temperature))
    assert out.shape == (B, N, classes_a + 1)
    assert jnp.allclose(out, ref_a, atol=3e-1, rtol=5e-2), "bf16 path mismatch"

    # 3) bf16 logits output (halves the writeback stream).
    out = jax.block_until_ready(zeroshot_fc_forward(
        xa, p_bf16, norm_temperature=norm_temperature, out_dtype=jnp.bfloat16))
    assert out.dtype == jnp.bfloat16 and out.shape == (B, N, classes_a + 1)
    assert jnp.allclose(out.astype(jnp.float32), ref_a, atol=3e-1, rtol=5e-2), \
        "bf16-logits path mismatch"

    # ---- Setup B: lane-aligned d_in (zero-copy x) + larger class count -------
    D_in_b, zs_dim_b, classes_b = 128, 64, 600   # -> C+1 = 601 logits per row
    xb = jax.random.normal(k_xb, (B, N, D_in_b), jnp.float32)
    lw_b, lb_b, zs_b = build_params(k_pb, input_size=D_in_b,
                                    zs_weight_dim=zs_dim_b, num_classes=classes_b)
    ref_b = _reference(xb, lw_b, lb_b, zs_b, norm_temperature)

    # 4) forced tc=256: exercises the tiled class axis (xn-scratch reuse, j > 0).
    p_tiled = prepare_zeroshot_params(lw_b, lb_b, zs_b,
                                      compute_dtype=jnp.float32, tc=256)
    out = jax.block_until_ready(zeroshot_fc_forward(xb, p_tiled,
                                                    norm_temperature=norm_temperature))
    assert out.shape == (B, N, classes_b + 1)
    assert jnp.allclose(out, ref_b, atol=2e-4, rtol=2e-4), "tiled-class path mismatch"

    # 5) bf16 compute with f32 x fed straight through (in-kernel cast path).
    p_bf16_b = prepare_zeroshot_params(lw_b, lb_b, zs_b, compute_dtype=jnp.bfloat16)
    out = jax.block_until_ready(zeroshot_fc_forward(xb, p_bf16_b,
                                                    norm_temperature=norm_temperature))
    assert out.shape == (B, N, classes_b + 1)
    assert jnp.allclose(out, ref_b, atol=3e-1, rtol=5e-2), "zero-copy bf16 path mismatch"

    # TODO(synk): use_bias<0 (cls_bias add), classifier=str (CLIP text encoder)
    # and zs_weight_path='online'/file branches are not exercised; the default
    # config has use_bias=0.0, classifier=None, zs_weight_path='rand'.
    print("KERNEL_OK")
</pallas_src>

<mosaic_0001>
module attributes {stable_mosaic.version = 11 : i64} {
  func.func @_zeroshot_fc_kernel(%arg0: i32, %arg1: i32, %arg2: memref<16x128xf32, #tpu.memory_space<vmem>>, %arg3: memref<128x256xf32, #tpu.memory_space<vmem>>, %arg4: memref<1x256xf32, #tpu.memory_space<vmem>>, %arg5: memref<256x256xf32, #tpu.memory_space<vmem>>, %arg6: memref<16x256xf32, #tpu.memory_space<vmem>>, %arg7: memref<16x256xf32, #tpu.memory_space<vmem>>) attributes {dimension_semantics = [#tpu.dimension_semantics<parallel>, #tpu.dimension_semantics<arbitrary>], iteration_bounds = array<i64: 1, 1>, scalar_prefetch = 0 : i64, scratch_operands = 1 : i64, tpu.core_type = #tpu.core_type<tc>, window_params = [{transform_indices = @transform_0, window_bounds = array<i64: 16, 128>}, {pipeline_mode = #tpu.pipeline_mode<synchronous>, transform_indices = @transform_1, window_bounds = array<i64: 128, 256>}, {pipeline_mode = #tpu.pipeline_mode<synchronous>, transform_indices = @transform_2, window_bounds = array<i64: 1, 256>}, {pipeline_mode = #tpu.pipeline_mode<synchronous>, transform_indices = @transform_3, window_bounds = array<i64: 256, 256>}, {transform_indices = @transform_4, window_bounds = array<i64: 16, 256>}]} {
    %c0_i32 = arith.constant 0 : i32
    %0 = arith.cmpi eq, %arg1, %c0_i32 : i32
    %1 = arith.extui %0 : i1 to i32
    %c0_i32_0 = arith.constant 0 : i32
    %2 = arith.cmpi ne, %1, %c0_i32_0 : i32
    scf.if %2 {
      %c0_6 = arith.constant 0 : index
      %c0_7 = arith.constant 0 : index
      %7 = vector.load %arg2[%c0_6, %c0_7] : memref<16x128xf32, #tpu.memory_space<vmem>>, vector<16x128xf32>
      %c0_8 = arith.constant 0 : index
      %c0_9 = arith.constant 0 : index
      %8 = vector.load %arg3[%c0_8, %c0_9] : memref<128x256xf32, #tpu.memory_space<vmem>>, vector<128x256xf32>
      %cst_10 = arith.constant dense<0.000000e+00> : vector<16x256xf32>
      %9 = tpu.matmul %7, %8, %cst_10 {dimension_numbers = #tpu.dot_dimension_numbers<[1], [0], [0], [1], [0, 0, 1, 1], [], []>} : vector<16x128xf32>, vector<128x256xf32>, vector<16x256xf32> -> vector<16x256xf32>
      %c0_11 = arith.constant 0 : index
      %c0_12 = arith.constant 0 : index
      %10 = vector.load %arg4[%c0_11, %c0_12] : memref<1x256xf32, #tpu.memory_space<vmem>>, vector<1x256xf32>
      %11 = vector.broadcast %10 : vector<1x256xf32> to vector<16x256xf32>
      %12 = arith.addf %9, %11 : vector<16x256xf32>
      %13 = arith.mulf %12, %12 : vector<16x256xf32>
      %cst_13 = arith.constant dense<0.000000e+00> : vector<16xf32>
      %14 = vector.multi_reduction <add>, %13, %cst_13 [1] : vector<16x256xf32> to vector<16xf32>
      %15 = vector.shape_cast %14 : vector<16xf32> to vector<16x1xf32>
      %cst_14 = arith.constant 1.000000e-24 : f32
      %16 = vector.broadcast %cst_14 : f32 to vector<16x1xf32>
      %17 = arith.maximumf %15, %16 : vector<16x1xf32>
      %18 = math.rsqrt %17 : vector<16x1xf32>
      %cst_15 = arith.constant 5.000000e+01 : f32
      %19 = vector.broadcast %cst_15 : f32 to vector<16x1xf32>
      %20 = arith.mulf %19, %18 : vector<16x1xf32>
      %21 = vector.broadcast %20 : vector<16x1xf32> to vector<16x256xf32>
      %22 = arith.mulf %12, %21 : vector<16x256xf32>
      %c0_16 = arith.constant 0 : index
      %c0_17 = arith.constant 0 : index
      %23 = vector.load %arg7[%c0_16, %c0_17] : memref<16x256xf32, #tpu.memory_space<vmem>>, vector<16x256xf32>
      tpu.vector_store %arg7[%c0_16, %c0_17], %22 {strides = array<i32>} : memref<16x256xf32, #tpu.memory_space<vmem>>, vector<16x256xf32>,
    } else {
    }
    %c0 = arith.constant 0 : index
    %c0_1 = arith.constant 0 : index
    %3 = vector.load %arg7[%c0, %c0_1] : memref<16x256xf32, #tpu.memory_space<vmem>>, vector<16x256xf32>
    %c0_2 = arith.constant 0 : index
    %c0_3 = arith.constant 0 : index
    %4 = vector.load %arg5[%c0_2, %c0_3] : memref<256x256xf32, #tpu.memory_space<vmem>>, vector<256x256xf32>
    %cst = arith.constant dense<0.000000e+00> : vector<16x256xf32>
    %5 = tpu.matmul %3, %4, %cst {dimension_numbers = #tpu.dot_dimension_numbers<[1], [0], [0], [1], [0, 0, 1, 1], [], []>} : vector<16x256xf32>, vector<256x256xf32>, vector<16x256xf32> -> vector<16x256xf32>
    %c0_4 = arith.constant 0 : index
    %c0_5 = arith.constant 0 : index
    %6 = vector.load %arg6[%c0_4, %c0_5] : memref<16x256xf32, #tpu.memory_space<vmem>>, vector<16x256xf32>
    tpu.vector_store %arg6[%c0_4, %c0_5], %5 {strides = array<i32>} : memref<16x256xf32, #tpu.memory_space<vmem>>, vector<16x256xf32>,
    return
  }
  func.func @transform_0(%arg0: i32, %arg1: i32) -> (i32, i32) {
    %c0_i32 = arith.constant 0 : i32
    %c0_i32_0 = arith.constant 0 : i32
    return %arg0, %c0_i32 : i32, i32
  }
  func.func @transform_1(%arg0: i32, %arg1: i32) -> (i32, i32) {
    %c0_i32 = arith.constant 0 : i32
    %c0_i32_0 = arith.constant 0 : i32
    %c0_i32_1 = arith.constant 0 : i32
    return %c0_i32, %c0_i32_0 : i32, i32
  }
  func.func @transform_2(%arg0: i32, %arg1: i32) -> (i32, i32) {
    %c0_i32 = arith.constant 0 : i32
    %c0_i32_0 = arith.constant 0 : i32
    %c0_i32_1 = arith.constant 0 : i32
    return %c0_i32, %c0_i32_0 : i32, i32
  }
  func.func @transform_3(%arg0: i32, %arg1: i32) -> (i32, i32) {
    %c0_i32 = arith.constant 0 : i32
    %c0_i32_0 = arith.constant 0 : i32
    return %c0_i32, %arg1 : i32, i32
  }
  func.func @transform_4(%arg0: i32, %arg1: i32) -> (i32, i32) {
    %c0_i32 = arith.constant 0 : i32
    return %arg0, %arg1 : i32, i32
  }
}

module attributes {stable_mosaic.version = 11 : i64} {
  func.func @_zeroshot_fc_kernel(%arg0: i32, %arg1: i32, %arg2: memref<16x128xf32, #tpu.memory_space<vmem>>, %arg3: memref<128x256xf32, #tpu.memory_space<vmem>>, %arg4: memref<1x256xf32, #tpu.memory_space<vmem>>, %arg5: memref<256x256xf32, #tpu.memory_space<vmem>>, %arg6: memref<16x256xf32, #tpu.memory_space<vmem>>, %arg7: memref<16x256xf32, #tpu.memory_space<vmem>>) attributes {dimension_semantics = [#tpu.dimension_semantics<parallel>, #tpu.dimension_semantics<arbitrary>], iteration_bounds = array<i64: 1, 1>, scalar_prefetch = 0 : i64, scratch_operands = 1 : i64, tpu.core_type = #tpu.core_type<tc>, window_params = [{transform_indices = @transform_0, window_bounds = array<i64: 16, 128>}, {pipeline_mode = #tpu.pipeline_mode<synchronous>, transform_indices = @transform_1, window_bounds = array<i64: 128, 256>}, {pipeline_mode = #tpu.pipeline_mode<synchronous>, transform_indices = @transform_2, window_bounds = array<i64: 1, 256>}, {transform_indices = @transform_3, window_bounds = array<i64: 256, 256>}, {transform_indices = @transform_4, window_bounds = array<i64: 16, 256>}]} {
    %c0_i32 = arith.constant 0 : i32
    %0 = arith.cmpi eq, %arg1, %c0_i32 : i32
    %1 = arith.extui %0 : i1 to i32
    %c0_i32_0 = arith.constant 0 : i32
    %2 = arith.cmpi ne, %1, %c0_i32_0 : i32
    scf.if %2 {
      %c0_6 = arith.constant 0 : index
      %c0_7 = arith.constant 0 : index
      %7 = vector.load %arg2[%c0_6, %c0_7] : memref<16x128xf32, #tpu.memory_space<vmem>>, vector<16x128xf32>
      %c0_8 = arith.constant 0 : index
      %c0_9 = arith.constant 0 : index
      %8 = vector.load %arg3[%c0_8, %c0_9] : memref<128x256xf32, #tpu.memory_space<vmem>>, vector<128x256xf32>
      %cst_10 = arith.constant dense<0.000000e+00> : vector<16x256xf32>
      %9 = tpu.matmul %7, %8, %cst_10 {dimension_numbers = #tpu.dot_dimension_numbers<[1], [0], [0], [1], [0, 0, 1, 1], [], []>} : vector<16x128xf32>, vector<128x256xf32>, vector<16x256xf32> -> vector<16x256xf32>
      %c0_11 = arith.constant 0 : index
      %c0_12 = arith.constant 0 : index
      %10 = vector.load %arg4[%c0_11, %c0_12] : memref<1x256xf32, #tpu.memory_space<vmem>>, vector<1x256xf32>
      %11 = vector.broadcast %10 : vector<1x256xf32> to vector<16x256xf32>
      %12 = arith.addf %9, %11 : vector<16x256xf32>
      %13 = arith.mulf %12, %12 : vector<16x256xf32>
      %cst_13 = arith.constant dense<0.000000e+00> : vector<16xf32>
      %14 = vector.multi_reduction <add>, %13, %cst_13 [1] : vector<16x256xf32> to vector<16xf32>
      %15 = vector.shape_cast %14 : vector<16xf32> to vector<16x1xf32>
      %cst_14 = arith.constant 1.000000e-24 : f32
      %16 = vector.broadcast %cst_14 : f32 to vector<16x1xf32>
      %17 = arith.maximumf %15, %16 : vector<16x1xf32>
      %18 = math.rsqrt %17 : vector<16x1xf32>
      %cst_15 = arith.constant 5.000000e+01 : f32
      %19 = vector.broadcast %cst_15 : f32 to vector<16x1xf32>
      %20 = arith.mulf %19, %18 : vector<16x1xf32>
      %21 = vector.broadcast %20 : vector<16x1xf32> to vector<16x256xf32>
      %22 = arith.mulf %12, %21 : vector<16x256xf32>
      %c0_16 = arith.constant 0 : index
      %c0_17 = arith.constant 0 : index
      %23 = vector.load %arg7[%c0_16, %c0_17] : memref<16x256xf32, #tpu.memory_space<vmem>>, vector<16x256xf32>
      tpu.vector_store %arg7[%c0_16, %c0_17], %22 {strides = array<i32>} : memref<16x256xf32, #tpu.memory_space<vmem>>, vector<16x256xf32>,
    } else {
    }
    %c0 = arith.constant 0 : index
    %c0_1 = arith.constant 0 : index
    %3 = vector.load %arg7[%c0, %c0_1] : memref<16x256xf32, #tpu.memory_space<vmem>>, vector<16x256xf32>
    %c0_2 = arith.constant 0 : index
    %c0_3 = arith.constant 0 : index
    %4 = vector.load %arg5[%c0_2, %c0_3] : memref<256x256xf32, #tpu.memory_space<vmem>>, vector<256x256xf32>
    %cst = arith.constant dense<0.000000e+00> : vector<16x256xf32>
    %5 = tpu.matmul %3, %4, %cst {dimension_numbers = #tpu.dot_dimension_numbers<[1], [0], [0], [1], [0, 0, 1, 1], [], []>} : vector<16x256xf32>, vector<256x256xf32>, vector<16x256xf32> -> vector<16x256xf32>
    %c0_4 = arith.constant 0 : index
    %c0_5 = arith.constant 0 : index
    %6 = vector.load %arg6[%c0_4, %c0_5] : memref<16x256xf32, #tpu.memory_space<vmem>>, vector<16x256xf32>
    tpu.vector_store %arg6[%c0_4, %c0_5], %5 {strides = array<i32>} : memref<16x256xf32, #tpu.memory_space<vmem>>, vector<16x256xf32>,
    return
  }
  func.func @transform_0(%arg0: i32, %arg1: i32) -> (i32, i32) {
    %c0_i32 = arith.constant 0 : i32
    %c0_i32_0 = arith.constant 0 : i32
    return %arg0, %c0_i32 : i32, i32
  }
  func.func @transform_1(%arg0: i32, %arg1: i32) -> (i32, i32) {
    %c0_i32 = arith.constant 0 : i32
    %c0_i32_0 = arith.constant 0 : i32
    %c0_i32_1 = arith.constant 0 : i32
    return %c0_i32, %c0_i32_0 : i32, i32
  }
  func.func @transform_2(%arg0: i32, %arg1: i32) -> (i32, i32) {
    %c0_i32 = arith.constant 0 : i32
    %c0_i32_0 = arith.constant 0 : i32
    %c0_i32_1 = arith.constant 0 : i32
    return %c0_i32, %c0_i32_0 : i32, i32
  }
  func.func @transform_3(%arg0: i32, %arg1: i32) -> (i32, i32) {
    %c0_i32 = arith.constant 0 : i32
    %c0_i32_0 = arith.constant 0 : i32
    return %c0_i32, %arg1 : i32, i32
  }
  func.func @transform_4(%arg0: i32, %arg1: i32) -> (i32, i32) {
    %c0_i32 = arith.constant 0 : i32
    return %arg0, %arg1 : i32, i32
  }
}

</mosaic_0001>

<bundles_post_ra>
// kernel: tpu_custom_call.1
= control target key start
LH: loop header
LB: loop body
LE: loop exit
PB: predicated region body
PF: predicated region fallthrough
CT: control target
= control target key end

     0   :  { %9 = vsyncpa [#allocation4], 0  ;;  %s676_s0 = inlined_call_operand.hbm [shape: f32[16,128], index: 0, kind: input, shape index: {}]   ;;  %s677_s1 = inlined_call_operand.hbm [shape: f32[128,256], index: 1, kind: input, shape index: {}]   ;;  %s678_s2 = inlined_call_operand.vmem [shape: f32[1,256], index: 2, kind: input, shape index: {}]   ;;  %s679_s3 = inlined_call_operand.hbm [shape: f32[256,256], index: 3, kind: input, shape index: {}]   ;;  %s680_s4 = inlined_call_operand.hbm [shape: f32[16,256], index: 4, kind: output, shape index: {}]  }
   0x1   :  { %10 = vsyncpa [#allocation7], 0 }
   0x2   :  { %11 = vsyncpa [#allocation5], 0  ;;  %s580_s15 = smov [#allocation6]   ;;  %s486_s19 = scalar_lea.hbm %s677_s1, 4096 }
   0x3   :  { %s29_s16 = sshll.u32 %s580_s15, 4  ;;  %p487_p0 = scmp.ne.s32.totalorder %s677_s1, %s486_s19  ;;  %s30_s16 = int_to_ptr.vmem [resolvable:$true] %s29_s16 }
   0x4   :  { %p490_p1 = scmp.lt.u32.totalorder %s486_s19, %s677_s1 }
   0x6   :  { %p492_p2 = pnand %p490_p1, %p487_p0 }
   0x8   :  { %495 = shalt.err (!%p492_p2)
}
   0x9   :  { %s496_s24 = scalar_lea.vmem %s30_s16, 4096  ;;  %p501_p4 = scmp.lt.s32.totalorder %s30_s16, %s30_s16 }
   0xa   :  { %p497_p3 = scmp.ne.s32.totalorder %s30_s16, %s496_s24  ;;  %p502_p5 = scmp.lt.s32.totalorder %s496_s24, %s496_s24 }
   0xc   :  { %p503_p6 = por %p502_p5, %p501_p4 }
   0xe   :  { %p504_p7 = pnand %p503_p6, %p497_p3 }
  0x10   :  { %507 = shalt.err (!%p504_p7)
}
  0x11   :  { %s581_s25 = smov 256   ;;  %s582_s26 = smov 16  }
  0x12   :  { %35 = dma.hbm_to_vmem [thread:$0]  %s677_s1, 4096, %s30_s16, [#allocation7], %s581_s25, %s581_s25, %s582_s26  }
  0x13   :  { %s583_s29 = smov [#allocation3]   ;;  %s508_s7 = scalar_lea.hbm %s676_s0, 256 }
  0x14   :  { %s17_s30 = sshll.u32 %s583_s29, 4  ;;  %p509_p8 = scmp.ne.s32.totalorder %s676_s0, %s508_s7  ;;  %s18_s30 = int_to_ptr.vmem [resolvable:$true] %s17_s30 }
  0x15   :  { %p512_p9 = scmp.lt.u32.totalorder %s508_s7, %s676_s0 }
  0x17   :  { %p514_p10 = pnand %p512_p9, %p509_p8 }
  0x19   :  { %517 = shalt.err (!%p514_p10)
}
  0x1a   :  { %s518_s12 = scalar_lea.vmem %s18_s30, 256  ;;  %p523_p12 = scmp.lt.s32.totalorder %s18_s30, %s18_s30 }
  0x1b   :  { %p519_p11 = scmp.ne.s32.totalorder %s18_s30, %s518_s12  ;;  %p524_p13 = scmp.lt.s32.totalorder %s518_s12, %s518_s12 }
  0x1d   :  { %p525_p0 = por %p524_p13, %p523_p12 }
  0x1f   :  { %p526_p1 = pnand %p525_p0, %p519_p11 }
  0x21   :  { %529 = shalt.err (!%p526_p1)
}
  0x22   :  { %s584_s1 = smov 128   ;;  %s585_s13 = smov 8  }
  0x23   :  { %23 = dma.hbm_to_vmem [thread:$0]  %s676_s0, 256, %s18_s30, [#allocation4], %s584_s1, %s584_s1, %s585_s13  }
  0x24   :  { %s586_s16 = smov [#allocation8]   ;;  %s530_s20 = scalar_lea.hbm %s679_s3, 8192 }
  0x25   :  { %s43_s17 = sshll.u32 %s586_s16, 4  ;;  %p531_p2 = scmp.ne.s32.totalorder %s679_s3, %s530_s20  ;;  %s44_s17 = int_to_ptr.vmem [resolvable:$true] %s43_s17 }
  0x26   :  { %p534_p3 = scmp.lt.u32.totalorder %s530_s20, %s679_s3 }
  0x28   :  { %p536_p4 = pnand %p534_p3, %p531_p2 }
  0x2a   :  { %539 = shalt.err (!%p536_p4)
}
  0x2b   :  { %s540_s27 = scalar_lea.vmem %s44_s17, 8192  ;;  %p545_p6 = scmp.lt.s32.totalorder %s44_s17, %s44_s17 }
  0x2c   :  { %p541_p5 = scmp.ne.s32.totalorder %s44_s17, %s540_s27  ;;  %p546_p7 = scmp.lt.s32.totalorder %s540_s27, %s540_s27 }
  0x2e   :  { %p547_p8 = por %p546_p7, %p545_p6 }
  0x30   :  { %p548_p9 = pnand %p547_p8, %p541_p5 }
  0x32   :  { %551 = shalt.err (!%p548_p9)
}
  0x33   :  { %49 = dma.hbm_to_vmem [thread:$0]  %s679_s3, 8192, %s44_s17, [#allocation7], %s581_s25, %s581_s25, %s582_s26  }
  0x34   :  { %574 = dma.done.wait [#allocation4], 256  }
  0x35   :  { %575 = vsyncadd [#allocation4], 4294967040 }
  0x36   :  { %576 = dma.done.wait [#allocation7], 12288  }
  0x37   :  { %577 = vsyncadd [#allocation7], 4294955008  ;;  %v587_v0 = vmov 0.0   ;;  %v66_v1 = vld [vmem:[#allocation6 + $0x8] sm:$0xff]  ;;  %v68_v2 = vld [vmem:[#allocation6 + $0x18] sm:$0xff] }
  0x38   :  { %173 = vmatprep.mubr.f32.mxu0 %v587_v0  ;;  %v65_v3 = vld [vmem:[#allocation6] sm:$0xff]  ;;  %v377_v4 = vpack.c.bf16 %v68_v2, %v66_v1  ;;  %v67_v5 = vld [vmem:[#allocation6 + $0x10] sm:$0xff]  ;;  %v70_v6 = vld [vmem:[#allocation6 + $0x28] sm:$0xff] }
  0x39   :  { %v72_v7 = vld [vmem:[#allocation6 + $0x38] sm:$0xff]  ;;  %v379_v8 = vpack.c.bf16 %v67_v5, %v65_v3  ;;  %v69_v10 = vld [vmem:[#allocation6 + $0x20] sm:$0xff]  ;;  %v71_v11 = vld [vmem:[#allocation6 + $0x30] sm:$0xff] }
  0x3a   :  { %v381_v9 = vpack.c.bf16 %v72_v7, %v70_v6  ;;  %v74_v12 = vld [vmem:[#allocation6 + $0x48] sm:$0xff]  ;;  %378 = vmatprep.subr.bf16.mxu0 %v377_v4  ;;  %v76_v13 = vld [vmem:[#allocation6 + $0x58] sm:$0xff]  ;;  %v383_v14 = vpack.c.bf16 %v71_v11, %v69_v10  ;;  %v73_v16 = vld [vmem:[#allocation6 + $0x40] sm:$0xff] }
  0x3b   :  { %380 = vmatpush1.bf16.msra.mxu0 %v379_v8  ;;  %v385_v15 = vpack.c.bf16 %v76_v13, %v74_v12  ;;  %v75_v17 = vld [vmem:[#allocation6 + $0x50] sm:$0xff]  ;;  %v78_v18 = vld [vmem:[#allocation6 + $0x68] sm:$0xff]  ;;  %v80_v19 = vld [vmem:[#allocation6 + $0x78] sm:$0xff] }
  0x3c   :  { %382 = vmatprep.subr.bf16.mxu0 %v381_v9  ;;  %v387_v20 = vpack.c.bf16 %v75_v17, %v73_v16  ;;  %v389_v21 = vpack.c.bf16 %v80_v19, %v78_v18  ;;  %v77_v22 = vld [vmem:[#allocation6 + $0x60] sm:$0xff]  ;;  %v79_v23 = vld [vmem:[#allocation6 + $0x70] sm:$0xff]  ;;  %v82_v24 = vld [vmem:[#allocation6 + $0x88] sm:$0xff] }
  0x3d   :  { %v84_v25 = vld [vmem:[#allocation6 + $0x98] sm:$0xff]  ;;  %v391_v26 = vpack.c.bf16 %v79_v23, %v77_v22  ;;  %v81_v28 = vld [vmem:[#allocation6 + $0x80] sm:$0xff]  ;;  %v83_v29 = vld [vmem:[#allocation6 + $0x90] sm:$0xff] }
  0x3e   :  { %v393_v27 = vpack.c.bf16 %v84_v25, %v82_v24  ;;  %v86_v30 = vld [vmem:[#allocation6 + $0xa8] sm:$0xff]  ;;  %v88_v31 = vld [vmem:[#allocation6 + $0xb8] sm:$0xff]  ;;  %v395_v32 = vpack.c.bf16 %v83_v29, %v81_v28  ;;  %v85_v34 = vld [vmem:[#allocation6 + $0xa0] sm:$0xff] }
  0x3f   :  { %384 = vmatpush1.bf16.msra.mxu0 %v383_v14  ;;  %v397_v33 = vpack.c.bf16 %v88_v31, %v86_v30  ;;  %v87_v35 = vld [vmem:[#allocation6 + $0xb0] sm:$0xff]  ;;  %v90_v36 = vld [vmem:[#allocation6 + $0xc8] sm:$0xff]  ;;  %v92_v37 = vld [vmem:[#allocation6 + $0xd8] sm:$0xff] }
  0x40   :  { %386 = vmatprep.subr.bf16.mxu0 %v385_v15  ;;  %v399_v38 = vpack.c.bf16 %v87_v35, %v85_v34  ;;  %v401_v39 = vpack.c.bf16 %v92_v37, %v90_v36  ;;  %v89_v40 = vld [vmem:[#allocation6 + $0xc0] sm:$0xff]  ;;  %v91_v41 = vld [vmem:[#allocation6 + $0xd0] sm:$0xff]  ;;  %v94_v42 = vld [vmem:[#allocation6 + $0xe8] sm:$0xff] }
  0x41   :  { %v96_v43 = vld [vmem:[#allocation6 + $0xf8] sm:$0xff]  ;;  %v403_v44 = vpack.c.bf16 %v91_v41, %v89_v40  ;;  %v93_v46 = vld [vmem:[#allocation6 + $0xe0] sm:$0xff]  ;;  %v95_v47 = vld [vmem:[#allocation6 + $0xf0] sm:$0xff] }
  0x42   :  { %v405_v45 = vpack.c.bf16 %v96_v43, %v94_v42  ;;  %v407_v48 = vpack.c.bf16 %v95_v47, %v93_v46  ;;  %v63_v49 = vld [vmem:[#allocation3] sm:$0xff]  ;;  %v64_v50 = vld [vmem:[#allocation3 + $0x8] sm:$0xff]  ;;  %v215_v51 = vld [vmem:[#allocation8 + $0x8] sm:$0xff] }
  0x43   :  { %388 = vmatpush1.bf16.msra.mxu0 %v387_v20  ;;  %v217_v52 = vld [vmem:[#allocation8 + $0x18] sm:$0xff]  ;;  %v214_v53 = vld [vmem:[#allocation8] sm:$0xff]  ;;  %v216_v55 = vld [vmem:[#allocation8 + $0x10] sm:$0xff] }
  0x44   :  { %390 = vmatprep.subr.bf16.mxu0 %v389_v21  ;;  %v409_v54 = vpack.c.bf16 %v217_v52, %v215_v51  ;;  %v219_v56 = vld [vmem:[#allocation8 + $0x28] sm:$0xff]  ;;  %v221_v57 = vld [vmem:[#allocation8 + $0x38] sm:$0xff]  ;;  %v411_v58 = vpack.c.bf16 %v216_v55, %v214_v53  ;;  %v218_v60 = vld [vmem:[#allocation8 + $0x20] sm:$0xff] }
  0x45   :  { %v413_v59 = vpack.c.bf16 %v221_v57, %v219_v56  ;;  %v220_v61 = vld [vmem:[#allocation8 + $0x30] sm:$0xff]  ;;  %v223_v62 = vld [vmem:[#allocation8 + $0x48] sm:$0xff]  ;;  %v225_v63 = vld [vmem:[#allocation8 + $0x58] sm:$0xff] }
  0x46   :  { %410 = vmatprep.subr.bf16.mxu1 %v409_v54  ;;  %v415_v1 = vpack.c.bf16 %v220_v61, %v218_v60  ;;  %v222_v2 = vld [vmem:[#allocation8 + $0x40] sm:$0xff]  ;;  %v224_v3 = vld [vmem:[#allocation8 + $0x50] sm:$0xff]  ;;  %v227_v4 = vld [vmem:[#allocation8 + $0x68] sm:$0xff] }
  0x47   :  { %392 = vmatpush1.bf16.msra.mxu0 %v391_v26  ;;  %412 = vmatpush1.bf16.msra.mxu1 %v411_v58  ;;  %v229_v5 = vld [vmem:[#allocation8 + $0x78] sm:$0xff]  ;;  %v419_v6 = vpack.c.bf16 %v224_v3, %v222_v2  ;;  %v226_v8 = vld [vmem:[#allocation8 + $0x60] sm:$0xff]  ;;  %v228_v9 = vld [vmem:[#allocation8 + $0x70] sm:$0xff] }
  0x48   :  { %394 = vmatprep.subr.bf16.mxu0 %v393_v27  ;;  %414 = vmatprep.subr.bf16.mxu1 %v413_v59  ;;  %v421_v7 = vpack.c.bf16 %v229_v5, %v227_v4  ;;  %v231_v10 = vld [vmem:[#allocation8 + $0x88] sm:$0xff]  ;;  %v233_v11 = vld [vmem:[#allocation8 + $0x98] sm:$0xff]  ;;  %v423_v12 = vpack.c.bf16 %v228_v9, %v226_v8  ;;  %v230_v14 = vld [vmem:[#allocation8 + $0x80] sm:$0xff]  ;;  %v99_v59 = vlaneseq }
  0x49   :  { %v425_v13 = vpack.c.bf16 %v233_v11, %v231_v10  ;;  %v232_v15 = vld [vmem:[#allocation8 + $0x90] sm:$0xff]  ;;  %v235_v16 = vld [vmem:[#allocation8 + $0xa8] sm:$0xff]  ;;  %v237_v17 = vld [vmem:[#allocation8 + $0xb8] sm:$0xff] }
  0x4a   :  { %v427_v18 = vpack.c.bf16 %v232_v15, %v230_v14  ;;  %v429_v19 = vpack.c.bf16 %v237_v17, %v235_v16  ;;  %v234_v20 = vld [vmem:[#allocation8 + $0xa0] sm:$0xff]  ;;  %v236_v21 = vld [vmem:[#allocation8 + $0xb0] sm:$0xff]  ;;  %v239_v22 = vld [vmem:[#allocation8 + $0xc8] sm:$0xff]  ;;  %v100_v60 = vshrl.u32 %v99_v59, 7 }
  0x4b   :  { %396 = vmatpush1.bf16.msra.mxu0 %v395_v32  ;;  %416 = vmatpush1.bf16.msra.mxu1 %v415_v1  ;;  %v241_v23 = vld [vmem:[#allocation8 + $0xd8] sm:$0xff]  ;;  %v431_v24 = vpack.c.bf16 %v236_v21, %v234_v20  ;;  %v238_v26 = vld [vmem:[#allocation8 + $0xc0] sm:$0xff]  ;;  %v240_v27 = vld [vmem:[#allocation8 + $0xd0] sm:$0xff] }
  0x4c   :  { %398 = vmatprep.subr.bf16.mxu0 %v397_v33  ;;  %v433_v25 = vpack.c.bf16 %v241_v23, %v239_v22  ;;  %v243_v28 = vld [vmem:[#allocation8 + $0xe8] sm:$0xff]  ;;  %v245_v29 = vld [vmem:[#allocation8 + $0xf8] sm:$0xff]  ;;  %v435_v30 = vpack.c.bf16 %v240_v27, %v238_v26  ;;  %v242_v32 = vld [vmem:[#allocation8 + $0xe0] sm:$0xff]  ;;  %v101_v61 = vsub.s32 0, %v100_v60 }
  0x4d   :  { %v437_v31 = vpack.c.bf16 %v245_v29, %v243_v28  ;;  %v244_v33 = vld [vmem:[#allocation8 + $0xf0] sm:$0xff]  ;;  %v247_v34 = vld [vmem:[#allocation8 + $0x108] sm:$0xff]  ;;  %v249_v35 = vld [vmem:[#allocation8 + $0x118] sm:$0xff] }
  0x4e   :  { %v439_v36 = vpack.c.bf16 %v244_v33, %v242_v32  ;;  %v441_v37 = vpack.c.bf16 %v249_v35, %v247_v34  ;;  %v251_v40 = vld [vmem:[#allocation8 + $0x128] sm:$0xff]  ;;  %v253_v41 = vld [vmem:[#allocation8 + $0x138] sm:$0xff]  ;;  %v256_v51 = vld [vmem:[#allocation8 + $0x150] sm:$0xff] }
  0x4f   :  { %400 = vmatpush1.bf16.msra.mxu0 %v399_v38  ;;  %v246_v38 = vld [vmem:[#allocation8 + $0x100] sm:$0xff]  ;;  %v445_v43 = vpack.c.bf16 %v253_v41, %v251_v40  ;;  %v255_v46 = vld [vmem:[#allocation8 + $0x148] sm:$0xff]  ;;  %v257_v47 = vld [vmem:[#allocation8 + $0x158] sm:$0xff] }
  0x50   :  { %402 = vmatprep.subr.bf16.mxu0 %v401_v39  ;;  %v248_v39 = vld [vmem:[#allocation8 + $0x110] sm:$0xff]  ;;  %v259_v52 = vld [vmem:[#allocation8 + $0x168] sm:$0xff]  ;;  %v261_v53 = vld [vmem:[#allocation8 + $0x178] sm:$0xff] }
  0x51   :  { %v443_v42 = vpack.c.bf16 %v248_v39, %v246_v38  ;;  %v453_v55 = vpack.c.bf16 %v261_v53, %v259_v52  ;;  %v258_v56 = vld [vmem:[#allocation8 + $0x160] sm:$0xff]  ;;  %v260_v57 = vld [vmem:[#allocation8 + $0x170] sm:$0xff]  ;;  %v263_v16 = vld [vmem:[#allocation8 + $0x188] sm:$0xff] }
  0x52   :  { %v455_v58 = vpack.c.bf16 %v260_v57, %v258_v56  ;;  %v265_v17 = vld [vmem:[#allocation8 + $0x198] sm:$0xff]  ;;  %v264_v20 = vld [vmem:[#allocation8 + $0x190] sm:$0xff]  ;;  %v267_v22 = vld [vmem:[#allocation8 + $0x1a8] sm:$0xff] }
  0x53   :  { %404 = vmatpush1.bf16.msra.mxu0 %v403_v44  ;;  %v250_v44 = vld [vmem:[#allocation8 + $0x120] sm:$0xff]  ;;  %v269_v23 = vld [vmem:[#allocation8 + $0x1b8] sm:$0xff]  ;;  %v268_v26 = vld [vmem:[#allocation8 + $0x1b0] sm:$0xff] }
  0x54   :  { %406 = vmatprep.subr.bf16.mxu0 %v405_v45  ;;  %v252_v45 = vld [vmem:[#allocation8 + $0x130] sm:$0xff]  ;;  %v271_v28 = vld [vmem:[#allocation8 + $0x1c8] sm:$0xff]  ;;  %v273_v29 = vld [vmem:[#allocation8 + $0x1d8] sm:$0xff] }
  0x55   :  { %v272_v32 = vld [vmem:[#allocation8 + $0x1d0] sm:$0xff]  ;;  %v275_v34 = vld [vmem:[#allocation8 + $0x1e8] sm:$0xff]  ;;  %v277_v35 = vld [vmem:[#allocation8 + $0x1f8] sm:$0xff] }
  0x56   :  { %v276_v38 = vld [vmem:[#allocation8 + $0x1f0] sm:$0xff] }
  0x57   :  { %408 = vmatpush1.bf16.msra.mxu0 %v407_v48  ;;  %v447_v48 = vpack.c.bf16 %v252_v45, %v250_v44 }
  0x5a   :  { %174 = vmatmul.mubr.f32.vlgmr.msra.gmra.mrb[0].mxu0 %v63_v49  ;;  %v449_v49 = vpack.c.bf16 %v257_v47, %v255_v46 }
  0x5b   :  { %179 = vmatprep.mubr.f32.mxu0 %v587_v0  ;;  %v417_v0 = vpack.c.bf16 %v225_v63, %v223_v62  ;;  %v97_v62 = vld [vmem:[%s678_s2] sm:$0x3]  ;;  %v105_v63 = vsub.s32 1, %v100_v60  ;;  %s588_s2 = smov [#allocation9]  }
  0x5c   :  { %v102_v1 = vrot.slane %v97_v62, %v101_v61  ;;  %s364_s30 = sshll.u32 %s588_s2, 4  ;;  %s365_s30 = int_to_ptr.vmem [resolvable:$true] %s364_s30 }
  0x5d   :  { %418 = vmatprep.subr.bf16.mxu1 %v417_v0  ;;  %v106_v0 = vrot.slane %v97_v62, %v105_v63  ;;  %s552_s5 = scalar_lea.vmem %s365_s30, 512  ;;  %p557_p11 = scmp.lt.s32.totalorder %s365_s30, %s365_s30 }
  0x5e   :  { %180 = vmatmul.mubr.f32.gmra.mrb[2].mxu0 %v64_v50  ;;  %420 = vmatpush1.bf16.msra.mxu1 %v419_v6  ;;  %v254_v50 = vld [vmem:[#allocation8 + $0x140] sm:$0xff]  ;;  %p553_p10 = scmp.ne.s32.totalorder %s365_s30, %s552_s5  ;;  %p558_p12 = scmp.lt.s32.totalorder %s552_s5, %s552_s5 }
  0x5f   :  { %422 = vmatprep.subr.bf16.mxu1 %v421_v7  ;;  %v451_v54 = vpack.c.bf16 %v256_v51, %v254_v50 }
  0x60   :  { %p559_p13 = por %p558_p12, %p557_p11 }
  0x62   :  { %424 = vmatpush1.bf16.msra.mxu1 %v423_v12  ;;  %p560_p0 = pnand %p559_p13, %p553_p10 }
  0x63   :  { %426 = vmatprep.subr.bf16.mxu1 %v425_v13 }
  0x66   :  { %428 = vmatpush1.bf16.msra.mxu1 %v427_v18  ;;  %v457_v18 = vpack.c.bf16 %v265_v17, %v263_v16 }
  0x67   :  { %430 = vmatprep.subr.bf16.mxu1 %v429_v19  ;;  %v262_v19 = vld [vmem:[#allocation8 + $0x180] sm:$0xff] }
  0x68   :  { %v459_v21 = vpack.c.bf16 %v264_v20, %v262_v19 }
  0x6a   :  { %432 = vmatpush1.bf16.msra.mxu1 %v431_v24  ;;  %v461_v24 = vpack.c.bf16 %v269_v23, %v267_v22 }
  0x6b   :  { %434 = vmatprep.subr.bf16.mxu1 %v433_v25  ;;  %v266_v25 = vld [vmem:[#allocation8 + $0x1a0] sm:$0xff] }
  0x6c   :  { %v463_v27 = vpack.c.bf16 %v268_v26, %v266_v25 }
  0x6e   :  { %436 = vmatpush1.bf16.msra.mxu1 %v435_v30  ;;  %v465_v30 = vpack.c.bf16 %v273_v29, %v271_v28 }
  0x6f   :  { %438 = vmatprep.subr.bf16.mxu1 %v437_v31  ;;  %v270_v31 = vld [vmem:[#allocation8 + $0x1c0] sm:$0xff] }
  0x70   :  { %v467_v33 = vpack.c.bf16 %v272_v32, %v270_v31 }
  0x72   :  { %440 = vmatpush1.bf16.msra.mxu1 %v439_v36  ;;  %v469_v36 = vpack.c.bf16 %v277_v35, %v275_v34 }
  0x73   :  { %442 = vmatprep.subr.bf16.mxu1 %v441_v37  ;;  %v274_v37 = vld [vmem:[#allocation8 + $0x1e0] sm:$0xff] }
  0x74   :  { %v471_v39 = vpack.c.bf16 %v276_v38, %v274_v37 }
  0x76   :  { %444 = vmatpush1.bf16.msra.mxu1 %v443_v42 }
  0x77   :  { %446 = vmatprep.subr.bf16.mxu1 %v445_v43 }
  0x7a   :  { %448 = vmatpush1.bf16.msra.mxu1 %v447_v48 }
  0x7b   :  { %450 = vmatprep.subr.bf16.mxu1 %v449_v49 }
  0x7e   :  { %452 = vmatpush1.bf16.msra.mxu1 %v451_v54 }
  0x7f   :  { %454 = vmatprep.subr.bf16.mxu1 %v453_v55 }
  0x82   :  { %456 = vmatpush1.bf16.msra.mxu1 %v455_v58 }
  0x83   :  { %458 = vmatprep.subr.bf16.mxu1 %v457_v18 }
  0x86   :  { %460 = vmatpush1.bf16.msra.mxu1 %v459_v21 }
  0x87   :  { %462 = vmatprep.subr.bf16.mxu1 %v461_v24 }
  0x8a   :  { %464 = vmatpush1.bf16.msra.mxu1 %v463_v27 }
  0x8b   :  { %466 = vmatprep.subr.bf16.mxu1 %v465_v30 }
  0x8e   :  { %468 = vmatpush1.bf16.msra.mxu1 %v467_v33 }
  0x8f   :  { %470 = vmatprep.subr.bf16.mxu1 %v469_v36 }
  0x92   :  { %472 = vmatpush1.bf16.msra.mxu1 %v471_v39 }
 0x12d   :  { %v175_v2 = vpop.f32.mrb[0].mxu0 }
 0x12e   :  { %v176_v3 = vadd.f32 %v175_v2, %v102_v1  ;;  %v177_v4 = vpop.f32.mrb[1].mxu0 }
 0x12f   :  { %v178_v5 = vadd.f32 %v177_v4, %v106_v0 }
 0x130   :  { %v186_v6 = vmul.f32 %v176_v3, %v176_v3 }
 0x131   :  { %v181_v7 = vpop.f32.mrb[2].mxu0  ;;  %v187_v8 = vmul.f32 %v178_v5, %v178_v5 }
 0x132   :  { %v182_v9 = vadd.f32 %v181_v7, %v102_v1  ;;  %v183_v10 = vpop.f32.mrb[3].mxu0 }
 0x133   :  { %v184_v11 = vadd.f32 %v183_v10, %v106_v0  ;;  %v190_v12 = vadd.f32 %v187_v8, %v186_v6 }
 0x134   :  { %v188_v13 = vmul.f32 %v182_v9, %v182_v9 }
 0x135   :  { %v189_v14 = vmul.f32 %v184_v11, %v184_v11  ;;  %191 = vadd.xlane.f32.xlu0 %v190_v12 }
 0x137   :  { %v193_v15 = vadd.f32 %v189_v14, %v188_v13 }
 0x139   :  { %194 = vadd.xlane.f32.xlu0 %v193_v15 }
 0x1c2   :  { %v192_v40 = vpop.xlane.xlu0 %191 }
 0x1c3   :  { %v196_v41 = vmax.f32 %v192_v40, 1e-24 }
 0x1c5   :  { %482 = vrsqrt.f32 %v196_v41 }
 0x1c6   :  { %v195_v42 = vpop.xlane.xlu0 %194 }
 0x1c7   :  { %v197_v43 = vmax.f32 %v195_v42, 1e-24 }
 0x1c9   :  { %484 = vrsqrt.f32 %v197_v43 }
 0x1cf   :  { %v483_v44 = vpop.eup %482 }
 0x1d0   :  { %v200_v45 = vmul.f32 50.0, %v483_v44 }
 0x1d2   :  { %v203_v46 = vmul.f32 %v200_v45, %v178_v5  ;;  %v202_v47 = vmul.f32 %v200_v45, %v176_v3 }
 0x1d3   :  { %v485_v48 = vpop.eup %484 }
 0x1d4   :  { %v201_v49 = vmul.f32 50.0, %v485_v48  ;;  %342 = vmatprep.mubr.f32.mxu1 %v203_v46 }
 0x1d5   :  { %343 = vmatmul.mubr.f32.vlgmr.msra.gmra.mrb[0].mxu1 %v202_v47 }
 0x1d6   :  { %v205_v50 = vmul.f32 %v201_v49, %v184_v11  ;;  %v204_v51 = vmul.f32 %v201_v49, %v182_v9 }
 0x1d8   :  { %348 = vmatprep.mubr.f32.mxu1 %v205_v50 }
 0x1d9   :  { %349 = vmatmul.mubr.f32.gmra.mrb[2].mxu1 %v204_v51 }
 0x2a8   :  { %v344_v52 = vpop.f32.mrb[0].mxu1 }
 0x2a9   :  { %355 = vst [vmem:[#allocation9] sm:$0xff] %v344_v52  ;;  %v346_v53 = vpop.f32.mrb[1].mxu1 }
 0x2aa   :  { %356 = vst [vmem:[#allocation9 + $0x8] sm:$0xff] %v346_v53 }
 0x2ac   :  { %v350_v54 = vpop.f32.mrb[2].mxu1 }
 0x2ad   :  { %357 = vst [vmem:[#allocation9 + $0x10] sm:$0xff] %v350_v54  ;;  %v352_v55 = vpop.f32.mrb[3].mxu1 }
 0x2ae   :  { %358 = vst [vmem:[#allocation9 + $0x18] sm:$0xff] %v352_v55 }
 0x2af   :  { %563 = shalt.err (!%p560_p0)
}
 0x2b0   :  { %s564_s8 = scalar_lea.hbm %s680_s4, 512 }
 0x2b1   :  { %p565_p1 = scmp.ne.s32.totalorder %s680_s4, %s564_s8  ;;  %p568_p2 = scmp.lt.u32.totalorder %s564_s8, %s680_s4 }
 0x2b3   :  { %p570_p3 = pnand %p568_p2, %p565_p1 }
 0x2b5   :  { %573 = shalt.err (!%p570_p3)
}
 0x2b6   :  { %370 = dma.vmem_to_hbm [thread:$0]  %s365_s30, 512, %s680_s4, [#allocation5], %s581_s25, %s581_s25, %s582_s26  }
 0x2b7   :  { %578 = dma.done.wait [#allocation5], 512  }
 0x2b8   :  { %579 = vsyncadd [#allocation5], 4294966784 }
 0x2b9   :  { %374 = vsyncpa [#allocation4], 1 }
 0x2ba   :  { %375 = vsyncpa [#allocation7], 1 }
 0x2bb   :  { %376 = vsyncpa [#allocation5], 1 }

// kernel: tpu_custom_call.1
= control target key start
LH: loop header
LB: loop body
LE: loop exit
PB: predicated region body
PF: predicated region fallthrough
CT: control target
= control target key end

     0   :  { %9 = vsyncpa [#allocation4], 0  ;;  %s676_s0 = inlined_call_operand.hbm [shape: f32[16,128], index: 0, kind: input, shape index: {}]   ;;  %s677_s1 = inlined_call_operand.hbm [shape: f32[128,256], index: 1, kind: input, shape index: {}]   ;;  %s678_s2 = inlined_call_operand.vmem [shape: f32[1,256], index: 2, kind: input, shape index: {}]   ;;  %s679_s3 = inlined_call_operand.hbm [shape: f32[256,256], index: 3, kind: input, shape index: {}]   ;;  %s680_s4 = inlined_call_operand.hbm [shape: f32[16,256], index: 4, kind: output, shape index: {}]  }
   0x1   :  { %10 = vsyncpa [#allocation7], 0 }
   0x2   :  { %11 = vsyncpa [#allocation5], 0  ;;  %s580_s15 = smov [#allocation6]   ;;  %s486_s19 = scalar_lea.hbm %s677_s1, 4096 }
   0x3   :  { %s29_s16 = sshll.u32 %s580_s15, 4  ;;  %p487_p0 = scmp.ne.s32.totalorder %s677_s1, %s486_s19  ;;  %s30_s16 = int_to_ptr.vmem [resolvable:$true] %s29_s16 }
   0x4   :  { %p490_p1 = scmp.lt.u32.totalorder %s486_s19, %s677_s1 }
   0x6   :  { %p492_p2 = pnand %p490_p1, %p487_p0 }
   0x8   :  { %495 = shalt.err (!%p492_p2)
}
   0x9   :  { %s496_s24 = scalar_lea.vmem %s30_s16, 4096  ;;  %p501_p4 = scmp.lt.s32.totalorder %s30_s16, %s30_s16 }
   0xa   :  { %p497_p3 = scmp.ne.s32.totalorder %s30_s16, %s496_s24  ;;  %p502_p5 = scmp.lt.s32.totalorder %s496_s24, %s496_s24 }
   0xc   :  { %p503_p6 = por %p502_p5, %p501_p4 }
   0xe   :  { %p504_p7 = pnand %p503_p6, %p497_p3 }
  0x10   :  { %507 = shalt.err (!%p504_p7)
}
  0x11   :  { %s581_s25 = smov 256   ;;  %s582_s26 = smov 16  }
  0x12   :  { %35 = dma.hbm_to_vmem [thread:$0]  %s677_s1, 4096, %s30_s16, [#allocation7], %s581_s25, %s581_s25, %s582_s26  }
  0x13   :  { %s583_s29 = smov [#allocation3]   ;;  %s508_s7 = scalar_lea.hbm %s676_s0, 256 }
  0x14   :  { %s17_s30 = sshll.u32 %s583_s29, 4  ;;  %p509_p8 = scmp.ne.s32.totalorder %s676_s0, %s508_s7  ;;  %s18_s30 = int_to_ptr.vmem [resolvable:$true] %s17_s30 }
  0x15   :  { %p512_p9 = scmp.lt.u32.totalorder %s508_s7, %s676_s0 }
  0x17   :  { %p514_p10 = pnand %p512_p9, %p509_p8 }
  0x19   :  { %517 = shalt.err (!%p514_p10)
}
  0x1a   :  { %s518_s12 = scalar_lea.vmem %s18_s30, 256  ;;  %p523_p12 = scmp.lt.s32.totalorder %s18_s30, %s18_s30 }
  0x1b   :  { %p519_p11 = scmp.ne.s32.totalorder %s18_s30, %s518_s12  ;;  %p524_p13 = scmp.lt.s32.totalorder %s518_s12, %s518_s12 }
  0x1d   :  { %p525_p0 = por %p524_p13, %p523_p12 }
  0x1f   :  { %p526_p1 = pnand %p525_p0, %p519_p11 }
  0x21   :  { %529 = shalt.err (!%p526_p1)
}
  0x22   :  { %s584_s1 = smov 128   ;;  %s585_s13 = smov 8  }
  0x23   :  { %23 = dma.hbm_to_vmem [thread:$0]  %s676_s0, 256, %s18_s30, [#allocation4], %s584_s1, %s584_s1, %s585_s13  }
  0x24   :  { %s586_s16 = smov [#allocation8]   ;;  %s530_s20 = scalar_lea.hbm %s679_s3, 8192 }
  0x25   :  { %s43_s17 = sshll.u32 %s586_s16, 4  ;;  %p531_p2 = scmp.ne.s32.totalorder %s679_s3, %s530_s20  ;;  %s44_s17 = int_to_ptr.vmem [resolvable:$true] %s43_s17 }
  0x26   :  { %p534_p3 = scmp.lt.u32.totalorder %s530_s20, %s679_s3 }
  0x28   :  { %p536_p4 = pnand %p534_p3, %p531_p2 }
  0x2a   :  { %539 = shalt.err (!%p536_p4)
}
  0x2b   :  { %s540_s27 = scalar_lea.vmem %s44_s17, 8192  ;;  %p545_p6 = scmp.lt.s32.totalorder %s44_s17, %s44_s17 }
  0x2c   :  { %p541_p5 = scmp.ne.s32.totalorder %s44_s17, %s540_s27  ;;  %p546_p7 = scmp.lt.s32.totalorder %s540_s27, %s540_s27 }
  0x2e   :  { %p547_p8 = por %p546_p7, %p545_p6 }
  0x30   :  { %p548_p9 = pnand %p547_p8, %p541_p5 }
  0x32   :  { %551 = shalt.err (!%p548_p9)
}
  0x33   :  { %49 = dma.hbm_to_vmem [thread:$0]  %s679_s3, 8192, %s44_s17, [#allocation7], %s581_s25, %s581_s25, %s582_s26  }
  0x34   :  { %574 = dma.done.wait [#allocation4], 256  }
  0x35   :  { %575 = vsyncadd [#allocation4], 4294967040 }
  0x36   :  { %576 = dma.done.wait [#allocation7], 12288  }
  0x37   :  { %577 = vsyncadd [#allocation7], 4294955008  ;;  %v587_v0 = vmov 0.0   ;;  %v66_v1 = vld [vmem:[#allocation6 + $0x8] sm:$0xff]  ;;  %v68_v2 = vld [vmem:[#allocation6 + $0x18] sm:$0xff] }
  0x38   :  { %173 = vmatprep.mubr.f32.mxu0 %v587_v0  ;;  %v65_v3 = vld [vmem:[#allocation6] sm:$0xff]  ;;  %v377_v4 = vpack.c.bf16 %v68_v2, %v66_v1  ;;  %v67_v5 = vld [vmem:[#allocation6 + $0x10] sm:$0xff]  ;;  %v70_v6 = vld [vmem:[#allocation6 + $0x28] sm:$0xff] }
  0x39   :  { %v72_v7 = vld [vmem:[#allocation6 + $0x38] sm:$0xff]  ;;  %v379_v8 = vpack.c.bf16 %v67_v5, %v65_v3  ;;  %v69_v10 = vld [vmem:[#allocation6 + $0x20] sm:$0xff]  ;;  %v71_v11 = vld [vmem:[#allocation6 + $0x30] sm:$0xff] }
  0x3a   :  { %v381_v9 = vpack.c.bf16 %v72_v7, %v70_v6  ;;  %v74_v12 = vld [vmem:[#allocation6 + $0x48] sm:$0xff]  ;;  %378 = vmatprep.subr.bf16.mxu0 %v377_v4  ;;  %v76_v13 = vld [vmem:[#allocation6 + $0x58] sm:$0xff]  ;;  %v383_v14 = vpack.c.bf16 %v71_v11, %v69_v10  ;;  %v73_v16 = vld [vmem:[#allocation6 + $0x40] sm:$0xff] }
  0x3b   :  { %380 = vmatpush1.bf16.msra.mxu0 %v379_v8  ;;  %v385_v15 = vpack.c.bf16 %v76_v13, %v74_v12  ;;  %v75_v17 = vld [vmem:[#allocation6 + $0x50] sm:$0xff]  ;;  %v78_v18 = vld [vmem:[#allocation6 + $0x68] sm:$0xff]  ;;  %v80_v19 = vld [vmem:[#allocation6 + $0x78] sm:$0xff] }
  0x3c   :  { %382 = vmatprep.subr.bf16.mxu0 %v381_v9  ;;  %v387_v20 = vpack.c.bf16 %v75_v17, %v73_v16  ;;  %v389_v21 = vpack.c.bf16 %v80_v19, %v78_v18  ;;  %v77_v22 = vld [vmem:[#allocation6 + $0x60] sm:$0xff]  ;;  %v79_v23 = vld [vmem:[#allocation6 + $0x70] sm:$0xff]  ;;  %v82_v24 = vld [vmem:[#allocation6 + $0x88] sm:$0xff] }
  0x3d   :  { %v84_v25 = vld [vmem:[#allocation6 + $0x98] sm:$0xff]  ;;  %v391_v26 = vpack.c.bf16 %v79_v23, %v77_v22  ;;  %v81_v28 = vld [vmem:[#allocation6 + $0x80] sm:$0xff]  ;;  %v83_v29 = vld [vmem:[#allocation6 + $0x90] sm:$0xff] }
  0x3e   :  { %v393_v27 = vpack.c.bf16 %v84_v25, %v82_v24  ;;  %v86_v30 = vld [vmem:[#allocation6 + $0xa8] sm:$0xff]  ;;  %v88_v31 = vld [vmem:[#allocation6 + $0xb8] sm:$0xff]  ;;  %v395_v32 = vpack.c.bf16 %v83_v29, %v81_v28  ;;  %v85_v34 = vld [vmem:[#allocation6 + $0xa0] sm:$0xff] }
  0x3f   :  { %384 = vmatpush1.bf16.msra.mxu0 %v383_v14  ;;  %v397_v33 = vpack.c.bf16 %v88_v31, %v86_v30  ;;  %v87_v35 = vld [vmem:[#allocation6 + $0xb0] sm:$0xff]  ;;  %v90_v36 = vld [vmem:[#allocation6 + $0xc8] sm:$0xff]  ;;  %v92_v37 = vld [vmem:[#allocation6 + $0xd8] sm:$0xff] }
  0x40   :  { %386 = vmatprep.subr.bf16.mxu0 %v385_v15  ;;  %v399_v38 = vpack.c.bf16 %v87_v35, %v85_v34  ;;  %v401_v39 = vpack.c.bf16 %v92_v37, %v90_v36  ;;  %v89_v40 = vld [vmem:[#allocation6 + $0xc0] sm:$0xff]  ;;  %v91_v41 = vld [vmem:[#allocation6 + $0xd0] sm:$0xff]  ;;  %v94_v42 = vld [vmem:[#allocation6 + $0xe8] sm:$0xff] }
  0x41   :  { %v96_v43 = vld [vmem:[#allocation6 + $0xf8] sm:$0xff]  ;;  %v403_v44 = vpack.c.bf16 %v91_v41, %v89_v40  ;;  %v93_v46 = vld [vmem:[#allocation6 + $0xe0] sm:$0xff]  ;;  %v95_v47 = vld [vmem:[#allocation6 + $0xf0] sm:$0xff] }
  0x42   :  { %v405_v45 = vpack.c.bf16 %v96_v43, %v94_v42  ;;  %v407_v48 = vpack.c.bf16 %v95_v47, %v93_v46  ;;  %v63_v49 = vld [vmem:[#allocation3] sm:$0xff]  ;;  %v64_v50 = vld [vmem:[#allocation3 + $0x8] sm:$0xff]  ;;  %v215_v51 = vld [vmem:[#allocation8 + $0x8] sm:$0xff] }
  0x43   :  { %388 = vmatpush1.bf16.msra.mxu0 %v387_v20  ;;  %v217_v52 = vld [vmem:[#allocation8 + $0x18] sm:$0xff]  ;;  %v214_v53 = vld [vmem:[#allocation8] sm:$0xff]  ;;  %v216_v55 = vld [vmem:[#allocation8 + $0x10] sm:$0xff] }
  0x44   :  { %390 = vmatprep.subr.bf16.mxu0 %v389_v21  ;;  %v409_v54 = vpack.c.bf16 %v217_v52, %v215_v51  ;;  %v219_v56 = vld [vmem:[#allocation8 + $0x28] sm:$0xff]  ;;  %v221_v57 = vld [vmem:[#allocation8 + $0x38] sm:$0xff]  ;;  %v411_v58 = vpack.c.bf16 %v216_v55, %v214_v53  ;;  %v218_v60 = vld [vmem:[#allocation8 + $0x20] sm:$0xff] }
  0x45   :  { %v413_v59 = vpack.c.bf16 %v221_v57, %v219_v56  ;;  %v220_v61 = vld [vmem:[#allocation8 + $0x30] sm:$0xff]  ;;  %v223_v62 = vld [vmem:[#allocation8 + $0x48] sm:$0xff]  ;;  %v225_v63 = vld [vmem:[#allocation8 + $0x58] sm:$0xff] }
  0x46   :  { %410 = vmatprep.subr.bf16.mxu1 %v409_v54  ;;  %v415_v1 = vpack.c.bf16 %v220_v61, %v218_v60  ;;  %v222_v2 = vld [vmem:[#allocation8 + $0x40] sm:$0xff]  ;;  %v224_v3 = vld [vmem:[#allocation8 + $0x50] sm:$0xff]  ;;  %v227_v4 = vld [vmem:[#allocation8 + $0x68] sm:$0xff] }
  0x47   :  { %392 = vmatpush1.bf16.msra.mxu0 %v391_v26  ;;  %412 = vmatpush1.bf16.msra.mxu1 %v411_v58  ;;  %v229_v5 = vld [vmem:[#allocation8 + $0x78] sm:$0xff]  ;;  %v419_v6 = vpack.c.bf16 %v224_v3, %v222_v2  ;;  %v226_v8 = vld [vmem:[#allocation8 + $0x60] sm:$0xff]  ;;  %v228_v9 = vld [vmem:[#allocation8 + $0x70] sm:$0xff] }
  0x48   :  { %394 = vmatprep.subr.bf16.mxu0 %v393_v27  ;;  %414 = vmatprep.subr.bf16.mxu1 %v413_v59  ;;  %v421_v7 = vpack.c.bf16 %v229_v5, %v227_v4  ;;  %v231_v10 = vld [vmem:[#allocation8 + $0x88] sm:$0xff]  ;;  %v233_v11 = vld [vmem:[#allocation8 + $0x98] sm:$0xff]  ;;  %v423_v12 = vpack.c.bf16 %v228_v9, %v226_v8  ;;  %v230_v14 = vld [vmem:[#allocation8 + $0x80] sm:$0xff]  ;;  %v99_v59 = vlaneseq }
  0x49   :  { %v425_v13 = vpack.c.bf16 %v233_v11, %v231_v10  ;;  %v232_v15 = vld [vmem:[#allocation8 + $0x90] sm:$0xff]  ;;  %v235_v16 = vld [vmem:[#allocation8 + $0xa8] sm:$0xff]  ;;  %v237_v17 = vld [vmem:[#allocation8 + $0xb8] sm:$0xff] }
  0x4a   :  { %v427_v18 = vpack.c.bf16 %v232_v15, %v230_v14  ;;  %v429_v19 = vpack.c.bf16 %v237_v17, %v235_v16  ;;  %v234_v20 = vld [vmem:[#allocation8 + $0xa0] sm:$0xff]  ;;  %v236_v21 = vld [vmem:[#allocation8 + $0xb0] sm:$0xff]  ;;  %v239_v22 = vld [vmem:[#allocation8 + $0xc8] sm:$0xff]  ;;  %v100_v60 = vshrl.u32 %v99_v59, 7 }
  0x4b   :  { %396 = vmatpush1.bf16.msra.mxu0 %v395_v32  ;;  %416 = vmatpush1.bf16.msra.mxu1 %v415_v1  ;;  %v241_v23 = vld [vmem:[#allocation8 + $0xd8] sm:$0xff]  ;;  %v431_v24 = vpack.c.bf16 %v236_v21, %v234_v20  ;;  %v238_v26 = vld [vmem:[#allocation8 + $0xc0] sm:$0xff]  ;;  %v240_v27 = vld [vmem:[#allocation8 + $0xd0] sm:$0xff] }
  0x4c   :  { %398 = vmatprep.subr.bf16.mxu0 %v397_v33  ;;  %v433_v25 = vpack.c.bf16 %v241_v23, %v239_v22  ;;  %v243_v28 = vld [vmem:[#allocation8 + $0xe8] sm:$0xff]  ;;  %v245_v29 = vld [vmem:[#allocation8 + $0xf8] sm:$0xff]  ;;  %v435_v30 = vpack.c.bf16 %v240_v27, %v238_v26  ;;  %v242_v32 = vld [vmem:[#allocation8 + $0xe0] sm:$0xff]  ;;  %v101_v61 = vsub.s32 0, %v100_v60 }
  0x4d   :  { %v437_v31 = vpack.c.bf16 %v245_v29, %v243_v28  ;;  %v244_v33 = vld [vmem:[#allocation8 + $0xf0] sm:$0xff]  ;;  %v247_v34 = vld [vmem:[#allocation8 + $0x108] sm:$0xff]  ;;  %v249_v35 = vld [vmem:[#allocation8 + $0x118] sm:$0xff] }
  0x4e   :  { %v439_v36 = vpack.c.bf16 %v244_v33, %v242_v32  ;;  %v441_v37 = vpack.c.bf16 %v249_v35, %v247_v34  ;;  %v251_v40 = vld [vmem:[#allocation8 + $0x128] sm:$0xff]  ;;  %v253_v41 = vld [vmem:[#allocation8 + $0x138] sm:$0xff]  ;;  %v256_v51 = vld [vmem:[#allocation8 + $0x150] sm:$0xff] }
  0x4f   :  { %400 = vmatpush1.bf16.msra.mxu0 %v399_v38  ;;  %v246_v38 = vld [vmem:[#allocation8 + $0x100] sm:$0xff]  ;;  %v445_v43 = vpack.c.bf16 %v253_v41, %v251_v40  ;;  %v255_v46 = vld [vmem:[#allocation8 + $0x148] sm:$0xff]  ;;  %v257_v47 = vld [vmem:[#allocation8 + $0x158] sm:$0xff] }
  0x50   :  { %402 = vmatprep.subr.bf16.mxu0 %v401_v39  ;;  %v248_v39 = vld [vmem:[#allocation8 + $0x110] sm:$0xff]  ;;  %v259_v52 = vld [vmem:[#allocation8 + $0x168] sm:$0xff]  ;;  %v261_v53 = vld [vmem:[#allocation8 + $0x178] sm:$0xff] }
  0x51   :  { %v443_v42 = vpack.c.bf16 %v248_v39, %v246_v38  ;;  %v453_v55 = vpack.c.bf16 %v261_v53, %v259_v52  ;;  %v258_v56 = vld [vmem:[#allocation8 + $0x160] sm:$0xff]  ;;  %v260_v57 = vld [vmem:[#allocation8 + $0x170] sm:$0xff]  ;;  %v263_v16 = vld [vmem:[#allocation8 + $0x188] sm:$0xff] }
  0x52   :  { %v455_v58 = vpack.c.bf16 %v260_v57, %v258_v56  ;;  %v265_v17 = vld [vmem:[#allocation8 + $0x198] sm:$0xff]  ;;  %v264_v20 = vld [vmem:[#allocation8 + $0x190] sm:$0xff]  ;;  %v267_v22 = vld [vmem:[#allocation8 + $0x1a8] sm:$0xff] }
  0x53   :  { %404 = vmatpush1.bf16.msra.mxu0 %v403_v44  ;;  %v250_v44 = vld [vmem:[#allocation8 + $0x120] sm:$0xff]  ;;  %v269_v23 = vld [vmem:[#allocation8 + $0x1b8] sm:$0xff]  ;;  %v268_v26 = vld [vmem:[#allocation8 + $0x1b0] sm:$0xff] }
  0x54   :  { %406 = vmatprep.subr.bf16.mxu0 %v405_v45  ;;  %v252_v45 = vld [vmem:[#allocation8 + $0x130] sm:$0xff]  ;;  %v271_v28 = vld [vmem:[#allocation8 + $0x1c8] sm:$0xff]  ;;  %v273_v29 = vld [vmem:[#allocation8 + $0x1d8] sm:$0xff] }
  0x55   :  { %v272_v32 = vld [vmem:[#allocation8 + $0x1d0] sm:$0xff]  ;;  %v275_v34 = vld [vmem:[#allocation8 + $0x1e8] sm:$0xff]  ;;  %v277_v35 = vld [vmem:[#allocation8 + $0x1f8] sm:$0xff] }
  0x56   :  { %v276_v38 = vld [vmem:[#allocation8 + $0x1f0] sm:$0xff] }
  0x57   :  { %408 = vmatpush1.bf16.msra.mxu0 %v407_v48  ;;  %v447_v48 = vpack.c.bf16 %v252_v45, %v250_v44 }
  0x5a   :  { %174 = vmatmul.mubr.f32.vlgmr.msra.gmra.mrb[0].mxu0 %v63_v49  ;;  %v449_v49 = vpack.c.bf16 %v257_v47, %v255_v46 }
  0x5b   :  { %179 = vmatprep.mubr.f32.mxu0 %v587_v0  ;;  %v417_v0 = vpack.c.bf16 %v225_v63, %v223_v62  ;;  %v97_v62 = vld [vmem:[%s678_s2] sm:$0x3]  ;;  %v105_v63 = vsub.s32 1, %v100_v60  ;;  %s588_s2 = smov [#allocation9]  }
  0x5c   :  { %v102_v1 = vrot.slane %v97_v62, %v101_v61  ;;  %s364_s30 = sshll.u32 %s588_s2, 4  ;;  %s365_s30 = int_to_ptr.vmem [resolvable:$true] %s364_s30 }
  0x5d   :  { %418 = vmatprep.subr.bf16.mxu1 %v417_v0  ;;  %v106_v0 = vrot.slane %v97_v62, %v105_v63  ;;  %s552_s5 = scalar_lea.vmem %s365_s30, 512  ;;  %p557_p11 = scmp.lt.s32.totalorder %s365_s30, %s365_s30 }
  0x5e   :  { %180 = vmatmul.mubr.f32.gmra.mrb[2].mxu0 %v64_v50  ;;  %420 = vmatpush1.bf16.msra.mxu1 %v419_v6  ;;  %v254_v50 = vld [vmem:[#allocation8 + $0x140] sm:$0xff]  ;;  %p553_p10 = scmp.ne.s32.totalorder %s365_s30, %s552_s5  ;;  %p558_p12 = scmp.lt.s32.totalorder %s552_s5, %s552_s5 }
  0x5f   :  { %422 = vmatprep.subr.bf16.mxu1 %v421_v7  ;;  %v451_v54 = vpack.c.bf16 %v256_v51, %v254_v50 }
  0x60   :  { %p559_p13 = por %p558_p12, %p557_p11 }
  0x62   :  { %424 = vmatpush1.bf16.msra.mxu1 %v423_v12  ;;  %p560_p0 = pnand %p559_p13, %p553_p10 }
  0x63   :  { %426 = vmatprep.subr.bf16.mxu1 %v425_v13 }
  0x66   :  { %428 = vmatpush1.bf16.msra.mxu1 %v427_v18  ;;  %v457_v18 = vpack.c.bf16 %v265_v17, %v263_v16 }
  0x67   :  { %430 = vmatprep.subr.bf16.mxu1 %v429_v19  ;;  %v262_v19 = vld [vmem:[#allocation8 + $0x180] sm:$0xff] }
  0x68   :  { %v459_v21 = vpack.c.bf16 %v264_v20, %v262_v19 }
  0x6a   :  { %432 = vmatpush1.bf16.msra.mxu1 %v431_v24  ;;  %v461_v24 = vpack.c.bf16 %v269_v23, %v267_v22 }
  0x6b   :  { %434 = vmatprep.subr.bf16.mxu1 %v433_v25  ;;  %v266_v25 = vld [vmem:[#allocation8 + $0x1a0] sm:$0xff] }
  0x6c   :  { %v463_v27 = vpack.c.bf16 %v268_v26, %v266_v25 }
  0x6e   :  { %436 = vmatpush1.bf16.msra.mxu1 %v435_v30  ;;  %v465_v30 = vpack.c.bf16 %v273_v29, %v271_v28 }
  0x6f   :  { %438 = vmatprep.subr.bf16.mxu1 %v437_v31  ;;  %v270_v31 = vld [vmem:[#allocation8 + $0x1c0] sm:$0xff] }
  0x70   :  { %v467_v33 = vpack.c.bf16 %v272_v32, %v270_v31 }
  0x72   :  { %440 = vmatpush1.bf16.msra.mxu1 %v439_v36  ;;  %v469_v36 = vpack.c.bf16 %v277_v35, %v275_v34 }
  0x73   :  { %442 = vmatprep.subr.bf16.mxu1 %v441_v37  ;;  %v274_v37 = vld [vmem:[#allocation8 + $0x1e0] sm:$0xff] }
  0x74   :  { %v471_v39 = vpack.c.bf16 %v276_v38, %v274_v37 }
  0x76   :  { %444 = vmatpush1.bf16.msra.mxu1 %v443_v42 }
  0x77   :  { %446 = vmatprep.subr.bf16.mxu1 %v445_v43 }
  0x7a   :  { %448 = vmatpush1.bf16.msra.mxu1 %v447_v48 }
  0x7b   :  { %450 = vmatprep.subr.bf16.mxu1 %v449_v49 }
  0x7e   :  { %452 = vmatpush1.bf16.msra.mxu1 %v451_v54 }
  0x7f   :  { %454 = vmatprep.subr.bf16.mxu1 %v453_v55 }
  0x82   :  { %456 = vmatpush1.bf16.msra.mxu1 %v455_v58 }
  0x83   :  { %458 = vmatprep.subr.bf16.mxu1 %v457_v18 }
  0x86   :  { %460 = vmatpush1.bf16.msra.mxu1 %v459_v21 }
  0x87   :  { %462 = vmatprep.subr.bf16.mxu1 %v461_v24 }
  0x8a   :  { %464 = vmatpush1.bf16.msra.mxu1 %v463_v27 }
  0x8b   :  { %466 = vmatprep.subr.bf16.mxu1 %v465_v30 }
  0x8e   :  { %468 = vmatpush1.bf16.msra.mxu1 %v467_v33 }
  0x8f   :  { %470 = vmatprep.subr.bf16.mxu1 %v469_v36 }
  0x92   :  { %472 = vmatpush1.bf16.msra.mxu1 %v471_v39 }
 0x12d   :  { %v175_v2 = vpop.f32.mrb[0].mxu0 }
 0x12e   :  { %v176_v3 = vadd.f32 %v175_v2, %v102_v1  ;;  %v177_v4 = vpop.f32.mrb[1].mxu0 }
 0x12f   :  { %v178_v5 = vadd.f32 %v177_v4, %v106_v0 }
 0x130   :  { %v186_v6 = vmul.f32 %v176_v3, %v176_v3 }
 0x131   :  { %v181_v7 = vpop.f32.mrb[2].mxu0  ;;  %v187_v8 = vmul.f32 %v178_v5, %v178_v5 }
 0x132   :  { %v182_v9 = vadd.f32 %v181_v7, %v102_v1  ;;  %v183_v10 = vpop.f32.mrb[3].mxu0 }
 0x133   :  { %v184_v11 = vadd.f32 %v183_v10, %v106_v0  ;;  %v190_v12 = vadd.f32 %v187_v8, %v186_v6 }
 0x134   :  { %v188_v13 = vmul.f32 %v182_v9, %v182_v9 }
 0x135   :  { %v189_v14 = vmul.f32 %v184_v11, %v184_v11  ;;  %191 = vadd.xlane.f32.xlu0 %v190_v12 }
 0x137   :  { %v193_v15 = vadd.f32 %v189_v14, %v188_v13 }
 0x139   :  { %194 = vadd.xlane.f32.xlu0 %v193_v15 }
 0x1c2   :  { %v192_v40 = vpop.xlane.xlu0 %191 }
 0x1c3   :  { %v196_v41 = vmax.f32 %v192_v40, 1e-24 }
 0x1c5   :  { %482 = vrsqrt.f32 %v196_v41 }
 0x1c6   :  { %v195_v42 = vpop.xlane.xlu0 %194 }
 0x1c7   :  { %v197_v43 = vmax.f32 %v195_v42, 1e-24 }
 0x1c9   :  { %484 = vrsqrt.f32 %v197_v43 }
 0x1cf   :  { %v483_v44 = vpop.eup %482 }
 0x1d0   :  { %v200_v45 = vmul.f32 50.0, %v483_v44 }
 0x1d2   :  { %v203_v46 = vmul.f32 %v200_v45, %v178_v5  ;;  %v202_v47 = vmul.f32 %v200_v45, %v176_v3 }
 0x1d3   :  { %v485_v48 = vpop.eup %484 }
 0x1d4   :  { %v201_v49 = vmul.f32 50.0, %v485_v48  ;;  %342 = vmatprep.mubr.f32.mxu1 %v203_v46 }
 0x1d5   :  { %343 = vmatmul.mubr.f32.vlgmr.msra.gmra.mrb[0].mxu1 %v202_v47 }
 0x1d6   :  { %v205_v50 = vmul.f32 %v201_v49, %v184_v11  ;;  %v204_v51 = vmul.f32 %v201_v49, %v182_v9 }
 0x1d8   :  { %348 = vmatprep.mubr.f32.mxu1 %v205_v50 }
 0x1d9   :  { %349 = vmatmul.mubr.f32.gmra.mrb[2].mxu1 %v204_v51 }
 0x2a8   :  { %v344_v52 = vpop.f32.mrb[0].mxu1 }
 0x2a9   :  { %355 = vst [vmem:[#allocation9] sm:$0xff] %v344_v52  ;;  %v346_v53 = vpop.f32.mrb[1].mxu1 }
 0x2aa   :  { %356 = vst [vmem:[#allocation9 + $0x8] sm:$0xff] %v346_v53 }
 0x2ac   :  { %v350_v54 = vpop.f32.mrb[2].mxu1 }
 0x2ad   :  { %357 = vst [vmem:[#allocation9 + $0x10] sm:$0xff] %v350_v54  ;;  %v352_v55 = vpop.f32.mrb[3].mxu1 }
 0x2ae   :  { %358 = vst [vmem:[#allocation9 + $0x18] sm:$0xff] %v352_v55 }
 0x2af   :  { %563 = shalt.err (!%p560_p0)
}
 0x2b0   :  { %s564_s8 = scalar_lea.hbm %s680_s4, 512 }
 0x2b1   :  { %p565_p1 = scmp.ne.s32.totalorder %s680_s4, %s564_s8  ;;  %p568_p2 = scmp.lt.u32.totalorder %s564_s8, %s680_s4 }
 0x2b3   :  { %p570_p3 = pnand %p568_p2, %p565_p1 }
 0x2b5   :  { %573 = shalt.err (!%p570_p3)
}
 0x2b6   :  { %370 = dma.vmem_to_hbm [thread:$0]  %s365_s30, 512, %s680_s4, [#allocation5], %s581_s25, %s581_s25, %s582_s26  }
 0x2b7   :  { %578 = dma.done.wait [#allocation5], 512  }
 0x2b8   :  { %579 = vsyncadd [#allocation5], 4294966784 }
 0x2b9   :  { %374 = vsyncpa [#allocation4], 1 }
 0x2ba   :  { %375 = vsyncpa [#allocation7], 1 }
 0x2bb   :  { %376 = vsyncpa [#allocation5], 1 }

</bundles_post_ra>
